<compile_context>
chip_gen: v5e
topology: v5e:2x2
jax: 0.10.0
libtpu: 0.0.40
codegen_flags: <defaults>
</compile_context>

<pallas_src>
import functools

import jax
import jax.numpy as jnp
from jax.experimental import pallas as pl
from jax.experimental.pallas import tpu as pltpu


_VMEM_LIMIT_BYTES = 48 * 1024 * 1024    # fits v5e/v6e (128 MiB) and v7x (64 MiB)
_TARGET_BLOCK_BYTES = 4 * 1024 * 1024   # ~4 MiB f32 working block per grid step


def _simam_kernel(x_ref, o_ref, *, inv_n, e_lambda, inv_cols):
    # x_ref: (row_tile, H*W) block in VMEM. Each row is one (b, c) spatial map.
    x = x_ref[...].astype(jnp.float32)
    mu = jnp.sum(x, axis=-1, keepdims=True) * inv_cols       # E[x] over H,W
    xm = x - mu
    d = xm * xm                                              # (x - mu)^2 (reused)
    s = jnp.sum(d, axis=-1, keepdims=True)                   # sum over H,W
    # One tiny per-row reciprocal + broadcast multiply instead of a
    # full-tile per-element divide.
    denom = 4.0 * (s * inv_n + e_lambda)                     # (row_tile, 1)
    inv = pl.reciprocal(denom)                               # exact, per row
    y = d * inv + 0.5
    attn = jax.nn.sigmoid(y)
    o_ref[...] = (x * attn).astype(o_ref.dtype)


def _choose_row_tile(rows, cols, target_block_bytes):
    """Pick a row tile: large enough to amortize per-step overhead, small
    enough that double-buffered in/out blocks + f32 intermediates fit VMEM."""
    bytes_per_row = cols * 4  # size against the f32 working set
    max_rows = max(8, target_block_bytes // bytes_per_row)
    if rows <= max_rows:
        # Single block covering all rows; block == full array, so no 8-row
        # divisibility requirement and no padding needed.
        return rows
    # Prefer a multiple of 8 that divides `rows` exactly (no padding copy).
    cap = (max_rows // 8) * 8
    for t in range(cap, 7, -8):
        if rows % t == 0:
            return t
    # No exact divisor: fall back to the largest aligned tile (pads the tail).
    return cap


def simam_block(x, e_lambda=1e-4, target_block_bytes=_TARGET_BLOCK_BYTES):
    """SimAM attention: x * sigmoid(d / (4*(sum(d)/n + e_lambda)) + 0.5).

    x: (B, C, H, W) array (any float dtype). Output has the same dtype (so a
    bf16 model keeps HBM traffic halved; compute is upcast to f32 in-kernel).
    """
    b, c, h, w = x.shape
    n = h * w - 1
    rows = b * c
    cols = h * w

    x2 = x.reshape(rows, cols)

    row_tile = _choose_row_tile(rows, cols, target_block_bytes)
    pad_rows = (-rows) % row_tile
    if pad_rows:
        # Only taken when B*C has no suitable multiple-of-8 divisor; padded
        # rows give d == 0 -> output 0, and are sliced off below.
        x2 = jnp.pad(x2, ((0, pad_rows), (0, 0)))
    total_rows = rows + pad_rows
    grid = total_rows // row_tile

    kernel = functools.partial(
        _simam_kernel,
        inv_n=1.0 / float(n),
        e_lambda=float(e_lambda),
        inv_cols=1.0 / float(cols),
    )

    out2 = pl.pallas_call(
        kernel,
        out_shape=jax.ShapeDtypeStruct((total_rows, cols), x.dtype),
        grid_spec=pltpu.PrefetchScalarGridSpec(
            num_scalar_prefetch=0,
            grid=(grid,),
            in_specs=[pl.BlockSpec((row_tile, cols), lambda i: (i, 0))],
            out_specs=pl.BlockSpec((row_tile, cols), lambda i: (i, 0)),
        ),
        compiler_params=pltpu.CompilerParams(
            dimension_semantics=("parallel",),
            vmem_limit_bytes=_VMEM_LIMIT_BYTES,
        ),
    )(x2)

    if pad_rows:
        out2 = out2[:rows]
    return out2.reshape(b, c, h, w)


def _simam_reference(x, e_lambda=1e-4):
    b, c, h, w = x.shape
    n = w * h - 1
    mu = jnp.mean(x, axis=(2, 3), keepdims=True)
    d = (x - mu) ** 2
    y = d / (4.0 * (jnp.sum(d, axis=(2, 3), keepdims=True) / n + e_lambda)) + 0.5
    return x * jax.nn.sigmoid(y)


if __name__ == "__main__":
    key = jax.random.PRNGKey(0)

    # Primary check: module-sized input, single-block fast path.
    B, C, H, W = 2, 4, 16, 16   # rows = 8, cols = 256
    x = jax.random.normal(key, (B, C, H, W), dtype=jnp.float32)
    out = jax.block_until_ready(simam_block(x))
    ref = _simam_reference(x)
    assert out.shape == (B, C, H, W)
    assert jnp.allclose(out, ref, atol=1e-5, rtol=1e-5), "mismatch vs reference"

    # Multi-block path (tiny block budget forces grid > 1, no padding).
    k1, k2 = jax.random.split(key)
    x1 = jax.random.normal(k1, (2, 32, 16, 16), dtype=jnp.float32)   # rows = 64
    out1 = jax.block_until_ready(simam_block(x1, target_block_bytes=8 * 1024))
    assert jnp.allclose(out1, _simam_reference(x1), atol=1e-5, rtol=1e-5)

    # Padded-tail fallback path (rows = 12 has no multiple-of-8 divisor <= cap).
    x2 = jax.random.normal(k2, (3, 4, 16, 16), dtype=jnp.float32)    # rows = 12
    out2 = jax.block_until_ready(simam_block(x2, target_block_bytes=8 * 1024))
    assert jnp.allclose(out2, _simam_reference(x2), atol=1e-5, rtol=1e-5)

    print("KERNEL_OK")
</pallas_src>

<mosaic_0001>
module attributes {stable_mosaic.version = 11 : i64} {
  func.func @_simam_kernel(%arg0: i32, %arg1: memref<8x256xf32, #tpu.memory_space<vmem>>, %arg2: memref<8x256xf32, #tpu.memory_space<vmem>>) attributes {dimension_semantics = [#tpu.dimension_semantics<parallel>], iteration_bounds = array<i64: 1>, scalar_prefetch = 0 : i64, scratch_operands = 0 : i64, tpu.core_type = #tpu.core_type<tc>, window_params = [{transform_indices = @transform_0, window_bounds = array<i64: 8, 256>}, {transform_indices = @transform_1, window_bounds = array<i64: 8, 256>}]} {
    %c0 = arith.constant 0 : index
    %c0_0 = arith.constant 0 : index
    %0 = vector.load %arg1[%c0, %c0_0] : memref<8x256xf32, #tpu.memory_space<vmem>>, vector<8x256xf32>
    %cst = arith.constant dense<0.000000e+00> : vector<8xf32>
    %1 = vector.multi_reduction <add>, %0, %cst [1] : vector<8x256xf32> to vector<8xf32>
    %2 = vector.shape_cast %1 : vector<8xf32> to vector<8x1xf32>
    %cst_1 = arith.constant 3.906250e-03 : f32
    %3 = vector.broadcast %cst_1 : f32 to vector<8x1xf32>
    %4 = arith.mulf %2, %3 : vector<8x1xf32>
    %5 = vector.broadcast %4 : vector<8x1xf32> to vector<8x256xf32>
    %6 = arith.subf %0, %5 : vector<8x256xf32>
    %7 = arith.mulf %6, %6 : vector<8x256xf32>
    %cst_2 = arith.constant dense<0.000000e+00> : vector<8xf32>
    %8 = vector.multi_reduction <add>, %7, %cst_2 [1] : vector<8x256xf32> to vector<8xf32>
    %9 = vector.shape_cast %8 : vector<8xf32> to vector<8x1xf32>
    %cst_3 = arith.constant 0.00392156886 : f32
    %10 = vector.broadcast %cst_3 : f32 to vector<8x1xf32>
    %11 = arith.mulf %9, %10 : vector<8x1xf32>
    %cst_4 = arith.constant 9.99999974E-5 : f32
    %12 = vector.broadcast %cst_4 : f32 to vector<8x1xf32>
    %13 = arith.addf %11, %12 : vector<8x1xf32>
    %cst_5 = arith.constant 4.000000e+00 : f32
    %14 = vector.broadcast %cst_5 : f32 to vector<8x1xf32>
    %15 = arith.mulf %14, %13 : vector<8x1xf32>
    %16 = tpu.reciprocal %15 : vector<8x1xf32> -> vector<8x1xf32>
    %17 = vector.broadcast %16 : vector<8x1xf32> to vector<8x256xf32>
    %18 = arith.mulf %7, %17 : vector<8x256xf32>
    %cst_6 = arith.constant 5.000000e-01 : f32
    %19 = vector.broadcast %cst_6 : f32 to vector<8x256xf32>
    %20 = arith.addf %18, %19 : vector<8x256xf32>
    %21 = arith.negf %20 : vector<8x256xf32>
    %22 = math.exp %21 : vector<8x256xf32>
    %cst_7 = arith.constant 1.000000e+00 : f32
    %23 = vector.broadcast %cst_7 : f32 to vector<8x256xf32>
    %24 = arith.addf %23, %22 : vector<8x256xf32>
    %25 = arith.divf %23, %24 : vector<8x256xf32>
    %26 = arith.mulf %0, %25 : vector<8x256xf32>
    %c0_8 = arith.constant 0 : index
    %c0_9 = arith.constant 0 : index
    %27 = vector.load %arg2[%c0_8, %c0_9] : memref<8x256xf32, #tpu.memory_space<vmem>>, vector<8x256xf32>
    tpu.vector_store %arg2[%c0_8, %c0_9], %26 {strides = array<i32>} : memref<8x256xf32, #tpu.memory_space<vmem>>, vector<8x256xf32>,
    return
  }
  func.func @transform_0(%arg0: i32) -> (i32, i32) {
    %c0_i32 = arith.constant 0 : i32
    %c0_i32_0 = arith.constant 0 : i32
    return %arg0, %c0_i32 : i32, i32
  }
  func.func @transform_1(%arg0: i32) -> (i32, i32) {
    %c0_i32 = arith.constant 0 : i32
    %c0_i32_0 = arith.constant 0 : i32
    return %arg0, %c0_i32 : i32, i32
  }
}

</mosaic_0001>

<bundles_post_ra>
// kernel: tpu_custom_call.1
= control target key start
LH: loop header
LB: loop body
LE: loop exit
PB: predicated region body
PF: predicated region fallthrough
CT: control target
= control target key end

     0   :  { %6 = vsyncpa [#allocation3], 0  ;;  %s210_s0 = inlined_call_operand.hbm [shape: f32[8,256], index: 0, kind: input, shape index: {}]   ;;  %s211_s1 = inlined_call_operand.hbm [shape: f32[8,256], index: 1, kind: output, shape index: {}]  }
   0x1   :  { %7 = vsyncpa [#allocation4], 0  ;;  %s13_s8 = sshll.u32 %s210_s0, 4  ;;  %s182_s9 = smov [#allocation2]   ;;  %s14_s8 = int_to_ptr.hbm [resolvable:$true] %s13_s8 }
   0x2   :  { %s15_s10 = sshll.u32 %s182_s9, 4  ;;  %s16_s10 = int_to_ptr.vmem [resolvable:$true] %s15_s10 }
   0x3   :  { %18 = dma.hbm_to_vmem [thread:$0]  %s14_s8, 256, %s16_s10, [#allocation3]  }
   0x4   :  { %178 = dma.done.wait [#allocation3], 256  }
   0x5   :  { %179 = vsyncadd [#allocation3], 4294967040  ;;  %v197_v0 = vld [vmem:[#allocation2] sm:$0xff]  ;;  %v199_v1 = vld [vmem:[#allocation2 + $0x8] sm:$0xff]  ;;  %s183_s0 = smov [#allocation5]   ;;  %s106_s14 = sshll.u32 %s211_s1, 4  ;;  %s107_s14 = int_to_ptr.hbm [resolvable:$true] %s106_s14 }
   0x6   :  { %v25_v2 = vadd.f32 %v199_v1, %v197_v0  ;;  %s104_s11 = sshll.u32 %s183_s0, 4  ;;  %s105_s11 = int_to_ptr.vmem [resolvable:$true] %s104_s11 }
   0x8   :  { %26 = vadd.xlane.f32.xlu0 %v25_v2 }
  0x7b   :  { %v27_v3 = vpop.xlane.xlu0 %26 }
  0x7c   :  { %v28_v4 = vmul.f32 0.00390625, %v27_v3 }
  0x7e   :  { %v29_v5 = vsub.f32 %v197_v0, %v28_v4  ;;  %v30_v6 = vsub.f32 %v199_v1, %v28_v4 }
  0x80   :  { %v31_v7 = vmul.f32 %v29_v5, %v29_v5  ;;  %v32_v8 = vmul.f32 %v30_v6, %v30_v6 }
  0x82   :  { %v33_v9 = vadd.f32 %v32_v8, %v31_v7 }
  0x84   :  { %34 = vadd.xlane.f32.xlu0 %v33_v9 }
  0xf7   :  { %v35_v10 = vpop.xlane.xlu0 %34 }
  0xf8   :  { %v36_v11 = vmul.f32 0.003921569, %v35_v10 }
  0xfa   :  { %v37_v12 = vadd.f32 0.0001, %v36_v11 }
  0xfc   :  { %v38_v13 = vmul.f32 4.0, %v37_v12 }
  0xfe   :  { %120 = vrcp.f32 %v38_v13  ;;  %v50_v17 = vand.u32 2147483648, %v38_v13  ;;  %v48_v19 = vand.u32 2147483647, %v38_v13  ;;  %vm44_vm1 = vweird.f32 %v38_v13 }
 0x100   :  { %v51_v21 = vor.u32 1.1754944e-38, %v50_v17  ;;  %vm49_vm3 = vcmp.eq.f32.partialorder %v48_v19, 8.507059e+37 }
 0x104   :  { %v121_v14 = vpop.eup %120 }
 0x105   :  { %v40_v15 = vmul.f32 %v121_v14, %v38_v13  ;;  %vm45_vm0 = vweird.f32 %v121_v14 }
 0x106   :  { %vm46_vm2 = vmor %vm44_vm1, %vm45_vm0 }
 0x107   :  { %v41_v16 = vsub.f32 1.0, %v40_v15 }
 0x109   :  { %v42_v18 = vmul.f32 %v121_v14, %v41_v16 }
 0x10b   :  { %v43_v20 = vadd.f32 %v121_v14, %v42_v18 }
 0x10d   :  { %v47_v22 = vsel %vm46_vm2, %v121_v14, %v43_v20 }
 0x10e   :  { %v52_v23 = vsel %vm49_vm3, %v51_v21, %v47_v22 }
 0x10f   :  { %v53_v24 = vmul.f32 %v52_v23, %v31_v7  ;;  %v54_v25 = vmul.f32 %v52_v23, %v32_v8 }
 0x111   :  { %v55_v26 = vadd.f32 0.5, %v53_v24  ;;  %v56_v27 = vadd.f32 0.5, %v54_v25 }
 0x113   :  { %v116_v28 = vmul.f32 -1.442695, %v55_v26  ;;  %v117_v29 = vmul.f32 -1.442695, %v56_v27 }
 0x115   :  { %122 = vpow2.f32 %v116_v28 }
 0x116   :  { %124 = vpow2.f32 %v117_v29 }
 0x11b   :  { %v123_v30 = vpop.eup %122 }
 0x11c   :  { %v125_v31 = vpop.eup %124  ;;  %v63_v32 = vadd.f32 1.0, %v123_v30 }
 0x11d   :  { %v64_v33 = vadd.f32 1.0, %v125_v31 }
 0x11e   :  { %126 = vrcp.f32 %v63_v32  ;;  %v76_v39 = vand.u32 2147483648, %v63_v32  ;;  %v74_v42 = vand.u32 2147483647, %v63_v32  ;;  %vm70_vm6 = vweird.f32 %v63_v32 }
 0x11f   :  { %128 = vrcp.f32 %v64_v33  ;;  %v91_v43 = vand.u32 2147483648, %v64_v33  ;;  %v89_v45 = vand.u32 2147483647, %v64_v33  ;;  %vm85_vm8 = vweird.f32 %v64_v33 }
 0x120   :  { %v77_v47 = vor.u32 1.1754944e-38, %v76_v39  ;;  %vm75_vm9 = vcmp.eq.f32.partialorder %v74_v42, 8.507059e+37 }
 0x121   :  { %v92_v50 = vor.u32 1.1754944e-38, %v91_v43  ;;  %vm90_vm11 = vcmp.eq.f32.partialorder %v89_v45, 8.507059e+37 }
 0x124   :  { %v127_v34 = vpop.eup %126 }
 0x125   :  { %v129_v35 = vpop.eup %128  ;;  %v66_v36 = vmul.f32 %v127_v34, %v63_v32  ;;  %vm71_vm4 = vweird.f32 %v127_v34 }
 0x126   :  { %v81_v37 = vmul.f32 %v129_v35, %v64_v33  ;;  %vm86_vm5 = vweird.f32 %v129_v35  ;;  %vm72_vm7 = vmor %vm70_vm6, %vm71_vm4 }
 0x127   :  { %v67_v38 = vsub.f32 1.0, %v66_v36  ;;  %vm87_vm10 = vmor %vm85_vm8, %vm86_vm5 }
 0x128   :  { %v82_v40 = vsub.f32 1.0, %v81_v37 }
 0x129   :  { %v68_v41 = vmul.f32 %v127_v34, %v67_v38 }
 0x12a   :  { %v83_v44 = vmul.f32 %v129_v35, %v82_v40 }
 0x12b   :  { %v69_v46 = vadd.f32 %v127_v34, %v68_v41 }
 0x12c   :  { %v84_v48 = vadd.f32 %v129_v35, %v83_v44 }
 0x12d   :  { %v73_v49 = vsel %vm72_vm7, %v127_v34, %v69_v46 }
 0x12e   :  { %v78_v51 = vsel %vm75_vm9, %v77_v47, %v73_v49  ;;  %v88_v52 = vsel %vm87_vm10, %v129_v35, %v84_v48 }
 0x12f   :  { %v93_v53 = vsel %vm90_vm11, %v92_v50, %v88_v52  ;;  %v95_v54 = vmul.f32 %v78_v51, %v197_v0 }
 0x130   :  { %v96_v55 = vmul.f32 %v93_v53, %v199_v1 }
 0x131   :  { %97 = vst [vmem:[#allocation5] sm:$0xff] %v95_v54 }
 0x132   :  { %98 = vst [vmem:[#allocation5 + $0x8] sm:$0xff] %v96_v55 }
 0x133   :  { %109 = dma.vmem_to_hbm [thread:$0]  %s105_s11, 256, %s107_s14, [#allocation4]  }
 0x134   :  { %180 = dma.done.wait [#allocation4], 256  }
 0x135   :  { %181 = vsyncadd [#allocation4], 4294967040 }
 0x136   :  { %114 = vsyncpa [#allocation3], 1 }
 0x137   :  { %115 = vsyncpa [#allocation4], 1 }

</bundles_post_ra>
